<compile_context>
chip_gen: v5e
topology: v5e:2x2
jax: 0.10.0
libtpu: 0.0.40
codegen_flags: <defaults>
</compile_context>

<pallas_src>
import jax
import jax.numpy as jnp
from jax.experimental import pallas as pl
from jax.experimental.pallas import tpu as pltpu


# Batch lanes per grid step.  2048 keeps VMEM (~8 MiB incl. f32/bf16 intermediates and
# double-buffered x/q tiles) well inside every generation's scoped limit; raise for very
# large replay batches on v5e/v6e (128 MiB VMEM), keep <=2048 on v7x (64 MiB VMEM).
DEFAULT_TILE_B = 2048


def _cdiv(a, b):
    return (a + b - 1) // b


def _round_up(n, m):
    return ((n + m - 1) // m) * m


def dueling_kernel(xT_ref, w1T_ref, b1_ref, wh1T_ref, bh1_ref, w2T_ref, b2T_ref, qT_ref):
    # shared trunk: Linear(n_inputs, 256) + ReLU, feature-major (bf16 MXU, f32 acc)
    h = jnp.dot(w1T_ref[...], xT_ref[...], preferred_element_type=jnp.float32)
    h = jnp.maximum(h + b1_ref[...], 0.0).astype(jnp.bfloat16)          # (256, TB)

    # fused value||advantage hidden layer: Linear(256, 128+128) + ReLU
    va = jnp.dot(wh1T_ref[...], h, preferred_element_type=jnp.float32)
    va = jnp.maximum(va + bh1_ref[...], 0.0).astype(jnp.bfloat16)       # (256, TB)

    # fused head layer-2 + dueling combine (mean already folded into w2T/b2T):
    #   qT[a, b] = wv2.vh[:,b] + bv2 + wa2_centered[:,a].ah[:,b] + ba2_centered[a]
    qT_ref[...] = jnp.dot(w2T_ref[...], va,
                          preferred_element_type=jnp.float32) + b2T_ref[...]   # (8, TB)


def _resident(arr):
    """Weights/biases: same block every grid step -> stay VMEM-resident."""
    return pl.BlockSpec(arr.shape, lambda i: (0, 0))


def dueling_forward(x, p, tile_b=DEFAULT_TILE_B):
    """x: (..., n_inputs) -> q: (batch, n_actions) using prepared (fused) params."""
    w1T = p["w1T"]
    n_hidden, n_inputs = w1T.shape          # (256, n_inputs)
    n_pad = p["w2T"].shape[0]               # action rows padded to a multiple of 8
    n_actions = p["n_actions"]

    x2d = x.reshape(-1, n_inputs)           # mirrors x.view(-1, n_inputs)
    batch = x2d.shape[0]

    # ---- batch-lane tiling: multiple of 128, minimal padding, >=2 tiles for megacore ----
    lanes = _round_up(batch, 128)
    n_tiles = _cdiv(lanes, tile_b)
    if batch >= 1024:                       # let v7x shard tiles across both TensorCores
        n_tiles = max(n_tiles, 2)
    tb = _round_up(_cdiv(lanes, n_tiles), 128)
    padded = n_tiles * tb

    # feature-major input: (n_inputs, padded_batch) bf16
    xT = jnp.pad(x2d, ((0, padded - batch), (0, 0))).astype(jnp.bfloat16).T

    flops = 2 * padded * (n_inputs * n_hidden + n_hidden * n_hidden + n_hidden * n_pad)
    weight_bytes = sum(int(p[k].size) * int(p[k].dtype.itemsize)
                       for k in ("w1T", "b1", "wh1T", "bh1", "w2T", "b2T"))
    bytes_accessed = int(xT.size) * 2 + padded * n_pad * 4 + weight_bytes

    qT = pl.pallas_call(
        dueling_kernel,
        out_shape=jax.ShapeDtypeStruct((n_pad, padded), jnp.float32),
        grid_spec=pltpu.PrefetchScalarGridSpec(
            num_scalar_prefetch=0,
            grid=(n_tiles,),
            in_specs=[
                pl.BlockSpec((n_inputs, tb), lambda i: (0, i)),   # xT: streamed per tile
                _resident(p["w1T"]), _resident(p["b1"]),
                _resident(p["wh1T"]), _resident(p["bh1"]),
                _resident(p["w2T"]), _resident(p["b2T"]),
            ],
            out_specs=pl.BlockSpec((n_pad, tb), lambda i: (0, i)),  # lane-dense output
        ),
        compiler_params=pltpu.CompilerParams(
            dimension_semantics=("parallel",),   # megacore-shard batch tiles (v7x)
            vmem_limit_bytes=32 << 20,
        ),
        cost_estimate=pl.CostEstimate(
            flops=flops, transcendentals=0, bytes_accessed=bytes_accessed),
    )(xT, p["w1T"], p["b1"], p["wh1T"], p["bh1"], p["w2T"], p["b2T"])

    return qT[:n_actions, :batch].T


def init_params(key, n_inputs, n_actions):
    """PyTorch-style Linear params, stored as (in, out); biases (1, out); all f32."""
    ks = jax.random.split(key, 10)

    def lin(kw, kb, fan_in, fan_out):
        bound = 1.0 / jnp.sqrt(jnp.float32(fan_in))
        w = jax.random.uniform(kw, (fan_in, fan_out), jnp.float32, -bound, bound)
        b = jax.random.uniform(kb, (1, fan_out), jnp.float32, -bound, bound)
        return w, b

    w1, b1 = lin(ks[0], ks[1], n_inputs, 256)
    wv1, bv1 = lin(ks[2], ks[3], 256, 128)
    wv2, bv2 = lin(ks[4], ks[5], 128, 1)
    wa1, ba1 = lin(ks[6], ks[7], 256, 128)
    wa2, ba2 = lin(ks[8], ks[9], 128, n_actions)
    return dict(w1=w1, b1=b1, wv1=wv1, bv1=bv1, wv2=wv2, bv2=bv2,
                wa1=wa1, ba1=ba1, wa2=wa2, ba2=ba2)


def prepare_params(p, n_actions):
    """Fuse heads, fold the dueling mean into the weights, transpose to feature-major,
    pad action rows to a sublane multiple of 8, cast matmul inputs to bf16."""
    # trunk, (out, in)
    w1T = p["w1"].T                                               # (256, n_inputs)
    b1 = p["b1"].T                                                # (256, 1)

    # fused value||advantage hidden layer: rows 0..127 value, 128..255 advantage
    wh1T = jnp.concatenate([p["wv1"].T, p["wa1"].T], axis=0)      # (256, 256)
    bh1 = jnp.concatenate([p["bv1"], p["ba1"]], axis=1).T         # (256, 1)

    # fold mean-centering into the advantage layer-2 weights:  a' = a - mean(a)
    center = jnp.eye(n_actions, dtype=jnp.float32) - 1.0 / n_actions
    wa2c = p["wa2"] @ center                                      # (128, n_actions)
    ba2c = p["ba2"] - jnp.mean(p["ba2"], axis=1, keepdims=True)   # (1, n_actions)

    # fused, transposed final layer + "q = v + a'" combine:
    #   qT = w2T @ [vh; ah] + b2T ; cols 0..127 carry wv2 (broadcast over actions),
    #   cols 128..255 carry the mean-centered wa2.
    w2T = jnp.concatenate([jnp.tile(p["wv2"].T, (n_actions, 1)), wa2c.T], axis=1)
    b2T = (p["bv2"] + ba2c).T                                     # (n_actions, 1)

    # pad action rows to a multiple of 8 (valid/unmasked output block); padded rows -> 0
    n_pad = _round_up(n_actions, 8)
    w2T = jnp.pad(w2T, ((0, n_pad - n_actions), (0, 0)))
    b2T = jnp.pad(b2T, ((0, n_pad - n_actions), (0, 0)))

    return dict(
        w1T=w1T.astype(jnp.bfloat16), b1=b1,
        wh1T=wh1T.astype(jnp.bfloat16), bh1=bh1,
        w2T=w2T.astype(jnp.bfloat16), b2T=b2T,
        n_actions=n_actions,
    )


def reference_forward_f32(x, p):
    """Un-fused f32 forward mirroring the PyTorch module exactly."""
    x2d = x.reshape(-1, p["w1"].shape[0]).astype(jnp.float32)
    h = jax.nn.relu(x2d @ p["w1"] + p["b1"])
    v = jax.nn.relu(h @ p["wv1"] + p["bv1"]) @ p["wv2"] + p["bv2"]
    a = jax.nn.relu(h @ p["wa1"] + p["ba1"]) @ p["wa2"] + p["ba2"]
    return v + (a - a.mean(axis=1, keepdims=True))


def reference_forward_prepared(x, p):
    """jnp forward using the same fused bf16 feature-major weights as the kernel."""
    n_inputs = p["w1T"].shape[1]
    xT = x.reshape(-1, n_inputs).T.astype(jnp.bfloat16)
    h = jnp.maximum(jnp.dot(p["w1T"], xT, preferred_element_type=jnp.float32)
                    + p["b1"], 0.0).astype(jnp.bfloat16)
    va = jnp.maximum(jnp.dot(p["wh1T"], h, preferred_element_type=jnp.float32)
                     + p["bh1"], 0.0).astype(jnp.bfloat16)
    qT = jnp.dot(p["w2T"], va, preferred_element_type=jnp.float32) + p["b2T"]
    return qT[:p["n_actions"]].T


if __name__ == "__main__":
    n_inputs, n_actions, batch = 32, 4, 8
    key = jax.random.PRNGKey(0)
    k_param, k_x = jax.random.split(key)

    raw_params = init_params(k_param, n_inputs, n_actions)
    prepared = prepare_params(raw_params, n_actions)
    x = jax.random.normal(k_x, (batch, n_inputs), jnp.float32)

    q = dueling_forward(x, prepared)
    jax.block_until_ready(q)
    assert q.shape == (batch, n_actions)

    # Tight check: kernel vs. jnp path with identical fused bf16 weights / f32 accumulation.
    q_bf16_ref = reference_forward_prepared(x, prepared)
    assert jnp.allclose(q, q_bf16_ref, atol=2e-3, rtol=2e-3)

    # Semantic check: matches the un-fused f32 PyTorch forward up to bf16 rounding.
    q_f32_ref = reference_forward_f32(x, raw_params)
    assert jnp.allclose(q, q_f32_ref, atol=5e-2, rtol=5e-2)

    print("KERNEL_OK")
</pallas_src>

<mosaic_0001>
module attributes {stable_mosaic.version = 11 : i64} {
  func.func @dueling_kernel(%arg0: i32, %arg1: memref<32x128xbf16, #tpu.memory_space<vmem>>, %arg2: memref<256x32xbf16, #tpu.memory_space<vmem>>, %arg3: memref<256x1xf32, #tpu.memory_space<vmem>>, %arg4: memref<256x256xbf16, #tpu.memory_space<vmem>>, %arg5: memref<256x1xf32, #tpu.memory_space<vmem>>, %arg6: memref<8x256xbf16, #tpu.memory_space<vmem>>, %arg7: memref<8x1xf32, #tpu.memory_space<vmem>>, %arg8: memref<8x128xf32, #tpu.memory_space<vmem>>) attributes {dimension_semantics = [#tpu.dimension_semantics<parallel>], iteration_bounds = array<i64: 1>, scalar_prefetch = 0 : i64, scratch_operands = 0 : i64, tpu.core_type = #tpu.core_type<tc>, window_params = [{transform_indices = @transform_0, window_bounds = array<i64: 32, 128>}, {pipeline_mode = #tpu.pipeline_mode<synchronous>, transform_indices = @transform_1, window_bounds = array<i64: 256, 32>}, {pipeline_mode = #tpu.pipeline_mode<synchronous>, transform_indices = @transform_2, window_bounds = array<i64: 256, 1>}, {pipeline_mode = #tpu.pipeline_mode<synchronous>, transform_indices = @transform_3, window_bounds = array<i64: 256, 256>}, {pipeline_mode = #tpu.pipeline_mode<synchronous>, transform_indices = @transform_4, window_bounds = array<i64: 256, 1>}, {pipeline_mode = #tpu.pipeline_mode<synchronous>, transform_indices = @transform_5, window_bounds = array<i64: 8, 256>}, {pipeline_mode = #tpu.pipeline_mode<synchronous>, transform_indices = @transform_6, window_bounds = array<i64: 8, 1>}, {transform_indices = @transform_7, window_bounds = array<i64: 8, 128>}]} {
    %c0 = arith.constant 0 : index
    %c0_0 = arith.constant 0 : index
    %0 = vector.load %arg2[%c0, %c0_0] : memref<256x32xbf16, #tpu.memory_space<vmem>>, vector<256x32xbf16>
    %c0_1 = arith.constant 0 : index
    %c0_2 = arith.constant 0 : index
    %1 = vector.load %arg1[%c0_1, %c0_2] : memref<32x128xbf16, #tpu.memory_space<vmem>>, vector<32x128xbf16>
    %cst = arith.constant dense<0.000000e+00> : vector<256x128xf32>
    %2 = tpu.matmul %0, %1, %cst {dimension_numbers = #tpu.dot_dimension_numbers<[1], [0], [0], [1], [0, 0, 1, 1], [], []>} : vector<256x32xbf16>, vector<32x128xbf16>, vector<256x128xf32> -> vector<256x128xf32>
    %c0_3 = arith.constant 0 : index
    %c0_4 = arith.constant 0 : index
    %3 = vector.load %arg3[%c0_3, %c0_4] : memref<256x1xf32, #tpu.memory_space<vmem>>, vector<256x1xf32>
    %4 = vector.broadcast %3 : vector<256x1xf32> to vector<256x128xf32>
    %5 = arith.addf %2, %4 : vector<256x128xf32>
    %cst_5 = arith.constant 0.000000e+00 : f32
    %6 = vector.broadcast %cst_5 : f32 to vector<256x128xf32>
    %7 = arith.maximumf %5, %6 : vector<256x128xf32>
    %8 = arith.truncf %7 : vector<256x128xf32> to vector<256x128xbf16>
    %c0_6 = arith.constant 0 : index
    %c0_7 = arith.constant 0 : index
    %9 = vector.load %arg4[%c0_6, %c0_7] : memref<256x256xbf16, #tpu.memory_space<vmem>>, vector<256x256xbf16>
    %cst_8 = arith.constant dense<0.000000e+00> : vector<256x128xf32>
    %10 = tpu.matmul %9, %8, %cst_8 {dimension_numbers = #tpu.dot_dimension_numbers<[1], [0], [0], [1], [0, 0, 1, 1], [], []>} : vector<256x256xbf16>, vector<256x128xbf16>, vector<256x128xf32> -> vector<256x128xf32>
    %c0_9 = arith.constant 0 : index
    %c0_10 = arith.constant 0 : index
    %11 = vector.load %arg5[%c0_9, %c0_10] : memref<256x1xf32, #tpu.memory_space<vmem>>, vector<256x1xf32>
    %12 = vector.broadcast %11 : vector<256x1xf32> to vector<256x128xf32>
    %13 = arith.addf %10, %12 : vector<256x128xf32>
    %cst_11 = arith.constant 0.000000e+00 : f32
    %14 = vector.broadcast %cst_11 : f32 to vector<256x128xf32>
    %15 = arith.maximumf %13, %14 : vector<256x128xf32>
    %16 = arith.truncf %15 : vector<256x128xf32> to vector<256x128xbf16>
    %c0_12 = arith.constant 0 : index
    %c0_13 = arith.constant 0 : index
    %17 = vector.load %arg6[%c0_12, %c0_13] : memref<8x256xbf16, #tpu.memory_space<vmem>>, vector<8x256xbf16>
    %cst_14 = arith.constant dense<0.000000e+00> : vector<8x128xf32>
    %18 = tpu.matmul %17, %16, %cst_14 {dimension_numbers = #tpu.dot_dimension_numbers<[1], [0], [0], [1], [0, 0, 1, 1], [], []>} : vector<8x256xbf16>, vector<256x128xbf16>, vector<8x128xf32> -> vector<8x128xf32>
    %c0_15 = arith.constant 0 : index
    %c0_16 = arith.constant 0 : index
    %19 = vector.load %arg7[%c0_15, %c0_16] : memref<8x1xf32, #tpu.memory_space<vmem>>, vector<8x1xf32>
    %20 = vector.broadcast %19 : vector<8x1xf32> to vector<8x128xf32>
    %21 = arith.addf %18, %20 : vector<8x128xf32>
    %c0_17 = arith.constant 0 : index
    %c0_18 = arith.constant 0 : index
    %22 = vector.load %arg8[%c0_17, %c0_18] : memref<8x128xf32, #tpu.memory_space<vmem>>, vector<8x128xf32>
    tpu.vector_store %arg8[%c0_17, %c0_18], %21 {strides = array<i32>} : memref<8x128xf32, #tpu.memory_space<vmem>>, vector<8x128xf32>,
    return
  }
  func.func @transform_0(%arg0: i32) -> (i32, i32) {
    %c0_i32 = arith.constant 0 : i32
    %c0_i32_0 = arith.constant 0 : i32
    return %c0_i32, %arg0 : i32, i32
  }
  func.func @transform_1(%arg0: i32) -> (i32, i32) {
    %c0_i32 = arith.constant 0 : i32
    %c0_i32_0 = arith.constant 0 : i32
    %c0_i32_1 = arith.constant 0 : i32
    return %c0_i32, %c0_i32_0 : i32, i32
  }
  func.func @transform_2(%arg0: i32) -> (i32, i32) {
    %c0_i32 = arith.constant 0 : i32
    %c0_i32_0 = arith.constant 0 : i32
    %c0_i32_1 = arith.constant 0 : i32
    return %c0_i32, %c0_i32_0 : i32, i32
  }
  func.func @transform_3(%arg0: i32) -> (i32, i32) {
    %c0_i32 = arith.constant 0 : i32
    %c0_i32_0 = arith.constant 0 : i32
    %c0_i32_1 = arith.constant 0 : i32
    return %c0_i32, %c0_i32_0 : i32, i32
  }
  func.func @transform_4(%arg0: i32) -> (i32, i32) {
    %c0_i32 = arith.constant 0 : i32
    %c0_i32_0 = arith.constant 0 : i32
    %c0_i32_1 = arith.constant 0 : i32
    return %c0_i32, %c0_i32_0 : i32, i32
  }
  func.func @transform_5(%arg0: i32) -> (i32, i32) {
    %c0_i32 = arith.constant 0 : i32
    %c0_i32_0 = arith.constant 0 : i32
    %c0_i32_1 = arith.constant 0 : i32
    return %c0_i32, %c0_i32_0 : i32, i32
  }
  func.func @transform_6(%arg0: i32) -> (i32, i32) {
    %c0_i32 = arith.constant 0 : i32
    %c0_i32_0 = arith.constant 0 : i32
    %c0_i32_1 = arith.constant 0 : i32
    return %c0_i32, %c0_i32_0 : i32, i32
  }
  func.func @transform_7(%arg0: i32) -> (i32, i32) {
    %c0_i32 = arith.constant 0 : i32
    %c0_i32_0 = arith.constant 0 : i32
    return %c0_i32, %arg0 : i32, i32
  }
}

</mosaic_0001>

<bundles_post_ra>
// kernel: tpu_custom_call.1
= control target key start
LH: loop header
LB: loop body
LE: loop exit
PB: predicated region body
PF: predicated region fallthrough
CT: control target
= control target key end

     0   :  { %v1516_v3 = vmov 0   ;;  %s2207_s0 = inlined_call_operand.vmem [shape: bf16[32,128], index: 0, kind: input, shape index: {}]   ;;  %s2208_s1 = inlined_call_operand.vmem [shape: bf16[256,32], index: 1, kind: input, shape index: {}]   ;;  %s2209_s2 = inlined_call_operand.vmem [shape: f32[256,1], index: 2, kind: input, shape index: {}]   ;;  %s2210_s3 = inlined_call_operand.vmem [shape: bf16[256,256], index: 3, kind: input, shape index: {}]   ;;  %s2211_s4 = inlined_call_operand.vmem [shape: f32[256,1], index: 4, kind: input, shape index: {}]   ;;  %s2212_s5 = inlined_call_operand.vmem [shape: bf16[8,256], index: 5, kind: input, shape index: {}]   ;;  %s2213_s6 = inlined_call_operand.vmem [shape: f32[8,1], index: 6, kind: input, shape index: {}]   ;;  %s2214_s7 = inlined_call_operand.hbm [shape: f32[8,128], index: 7, kind: output, shape index: {}]  }
   0x1   :  { %v94_v0 = vld [vmem:[%s2209_s2 + $0xf0] sm:$0xff]  ;;  %v92_v1 = vld [vmem:[%s2209_s2 + $0xe0] sm:$0xff]  ;;  %1489 = vset.pattern.permute.xlu2 %v1516_v3  ;;  %1488 = vset.pattern.permute.xlu1 %v1516_v3  ;;  %v1434_v4 = vld [vmem:[%s2207_s0 + $0x8] sm:$0xff] }
   0x2   :  { %v78_v2 = vld [vmem:[%s2209_s2 + $0x70] sm:$0xff]  ;;  %1487 = vset.pattern.permute.xlu0 %v1516_v3  ;;  %238 = vperm.xlu2 %1489, %v92_v1   ;;  %v1433_v5 = vld [vmem:[%s2207_s0] sm:$0xff] }
   0x3   :  { %248 = vperm.xlu0 %1487, %v94_v0   ;;  %168 = vperm.xlu1 %1488, %v78_v2  }
   0x4   :  { %403 = vmatpush.bf16.msra.mxu0 %v1434_v4  ;;  %1467 = vmatpush.bf16.msra.mxu3 %v1434_v4 }
   0x5   :  { %12 = vsyncpa [#allocation3], 0  ;;  %v93_v6 = vld [vmem:[%s2209_s2 + $0xe8] sm:$0xff]  ;;  %v95_v7 = vld [vmem:[%s2209_s2 + $0xf8] sm:$0xff]  ;;  %vm348_vm0 = vcmask 261120  }
   0x6   :  { %v79_v8 = vld [vmem:[%s2209_s2 + $0x78] sm:$0xff]  ;;  %v1417_v9 = vld [vmem:[%s2208_s1] sm:$0xff]  ;;  %v90_v10 = vld [vmem:[%s2209_s2 + $0xd0] sm:$0xff] }
   0x7   :  { %v77_v11 = vld [vmem:[%s2209_s2 + $0x68] sm:$0xff]  ;;  %v76_v12 = vld [vmem:[%s2209_s2 + $0x60] sm:$0xff]  ;;  %v75_v13 = vld [vmem:[%s2209_s2 + $0x58] sm:$0xff] }
   0x8   :  { %404 = vmatpush.bf16.msra.mxu0 %v1433_v5  ;;  %1468 = vmatpush.bf16.msra.mxu3 %v1433_v5  ;;  %v91_v14 = vld [vmem:[%s2209_s2 + $0xd8] sm:$0xff]  ;;  %v74_v15 = vld [vmem:[%s2209_s2 + $0x50] sm:$0xff]  ;;  %v1418_v16 = vld [vmem:[%s2208_s1 + $0x8] sm:$0xff] }
   0x9   :  { %v72_v17 = vld [vmem:[%s2209_s2 + $0x40] sm:$0xff]  ;;  %v89_v19 = vld [vmem:[%s2209_s2 + $0xc8] sm:$0xff]  ;;  %v87_v20 = vld [vmem:[%s2209_s2 + $0xb8] sm:$0xff] }
   0xa   :  { %243 = vperm.xlu2 %1489, %v93_v6   ;;  %v88_v18 = vld [vmem:[%s2209_s2 + $0xc0] sm:$0xff]  ;;  %v86_v21 = vld [vmem:[%s2209_s2 + $0xb0] sm:$0xff]  ;;  %v73_v22 = vld [vmem:[%s2209_s2 + $0x48] sm:$0xff] }
   0xb   :  { %253 = vperm.xlu0 %1487, %v95_v7   ;;  %173 = vperm.xlu1 %1488, %v79_v8   ;;  %v1419_v23 = vld [vmem:[%s2208_s1 + $0x10] sm:$0xff]  ;;  %v84_v24 = vld [vmem:[%s2209_s2 + $0xa0] sm:$0xff]  ;;  %v71_v25 = vld [vmem:[%s2209_s2 + $0x38] sm:$0xff] }
   0xc   :  { %1273 = vmatmul.msk.bf16.vlgmr.msra.gmra.mxu0 %vm348_vm0, %v1417_v9  ;;  %v70_v26 = vld [vmem:[%s2209_s2 + $0x30] sm:$0xff]  ;;  %v69_v27 = vld [vmem:[%s2209_s2 + $0x28] sm:$0xff]  ;;  %v68_v29 = vld [vmem:[%s2209_s2 + $0x20] sm:$0xff] }
   0xd   :  { %v85_v28 = vld [vmem:[%s2209_s2 + $0xa8] sm:$0xff]  ;;  %v1420_v30 = vld [vmem:[%s2208_s1 + $0x18] sm:$0xff]  ;;  %v66_v31 = vld [vmem:[%s2209_s2 + $0x10] sm:$0xff] }
   0xe   :  { %v82_v32 = vld [vmem:[%s2209_s2 + $0x90] sm:$0xff]  ;;  %v83_v33 = vld [vmem:[%s2209_s2 + $0x98] sm:$0xff]  ;;  %v80_v34 = vld [vmem:[%s2209_s2 + $0x80] sm:$0xff] }
   0xf   :  { %v67_v35 = vld [vmem:[%s2209_s2 + $0x18] sm:$0xff]  ;;  %v1421_v36 = vld [vmem:[%s2208_s1 + $0x20] sm:$0xff]  ;;  %v65_v37 = vld [vmem:[%s2209_s2 + $0x8] sm:$0xff] }
  0x10   :  { %v64_v38 = vld [vmem:[%s2209_s2] sm:$0xff]  ;;  %v81_v39 = vld [vmem:[%s2209_s2 + $0x88] sm:$0xff]  ;;  %v581_v42 = vld [vmem:[%s2211_s4 + $0x78] sm:$0xff] }
  0x11   :  { %v1422_v40 = vld [vmem:[%s2208_s1 + $0x28] sm:$0xff]  ;;  %v578_v41 = vld [vmem:[%s2211_s4 + $0x60] sm:$0xff]  ;;  %v580_v43 = vld [vmem:[%s2211_s4 + $0x70] sm:$0xff] }
  0x12   :  { %228 = vperm.xlu2 %1489, %v90_v10   ;;  %v577_v44 = vld [vmem:[%s2211_s4 + $0x58] sm:$0xff]  ;;  %v576_v45 = vld [vmem:[%s2211_s4 + $0x50] sm:$0xff]  ;;  %v575_v49 = vld [vmem:[%s2211_s4 + $0x48] sm:$0xff] }
  0x13   :  { %163 = vperm.xlu1 %1488, %v77_v11   ;;  %158 = vperm.xlu0 %1487, %v76_v12   ;;  %v1423_v47 = vld [vmem:[%s2208_s1 + $0x30] sm:$0xff]  ;;  %v579_v50 = vld [vmem:[%s2211_s4 + $0x68] sm:$0xff]  ;;  %v597_v52 = vld [vmem:[%s2211_s4 + $0xf8] sm:$0xff] }
  0x14   :  { %v572_v48 = vld [vmem:[%s2211_s4 + $0x30] sm:$0xff]  ;;  %v574_v54 = vld [vmem:[%s2211_s4 + $0x40] sm:$0xff]  ;;  %v1424_v58 = vld [vmem:[%s2208_s1 + $0x38] sm:$0xff] }
  0x15   :  { %v1431_v51 = vld [vmem:[%s2208_s1 + $0x70] sm:$0xff]  ;;  %v594_v59 = vld [vmem:[%s2211_s4 + $0xe0] sm:$0xff]  ;;  %v571_v60 = vld [vmem:[%s2211_s4 + $0x28] sm:$0xff] }
  0x16   :  { %1287 = vmatmul.msk.bf16.vlgmr.msra.gmra.mxu3 %vm348_vm0, %v1431_v51  ;;  %v596_v53 = vld [vmem:[%s2211_s4 + $0xf0] sm:$0xff]  ;;  %v573_v61 = vld [vmem:[%s2211_s4 + $0x38] sm:$0xff]  ;;  %v570_v4 = vld [vmem:[%s2211_s4 + $0x20] sm:$0xff] }
  0x17   :  { %v1432_v63 = vld [vmem:[%s2208_s1 + $0x78] sm:$0xff]  ;;  %v568_v3 = vld [vmem:[%s2211_s4 + $0x10] sm:$0xff]  ;;  %v1425_v8 = vld [vmem:[%s2208_s1 + $0x40] sm:$0xff] }
  0x18   :  { %v569_v2 = vld [vmem:[%s2211_s4 + $0x18] sm:$0xff]  ;;  %v566_v9 = vld [vmem:[%s2211_s4] sm:$0xff]  ;;  %v595_v12 = vld [vmem:[%s2211_s4 + $0xe8] sm:$0xff] }
  0x19   :  { %v593_v10 = vld [vmem:[%s2211_s4 + $0xd8] sm:$0xff] }
  0x1a   :  { %153 = vperm.xlu2 %1489, %v75_v13  }
  0x1b   :  { %233 = vperm.xlu0 %1487, %v91_v14   ;;  %148 = vperm.xlu1 %1488, %v74_v15  }
  0x1c   :  { %1274 = vmatmul.msk.bf16.gmra.mxu0 %vm348_vm0, %v1418_v16  ;;  %v591_v16 = vld [vmem:[%s2211_s4 + $0xc8] sm:$0xff] }
  0x22   :  { %138 = vperm.xlu2 %1489, %v72_v17   ;;  %v590_v17 = vld [vmem:[%s2211_s4 + $0xc0] sm:$0xff] }
  0x23   :  { %218 = vperm.xlu0 %1487, %v88_v18   ;;  %223 = vperm.xlu1 %1488, %v89_v19   ;;  %v592_v19 = vld [vmem:[%s2211_s4 + $0xd0] sm:$0xff] }
  0x26   :  { %1288 = vmatmul.msk.bf16.gmra.mxu3 %vm348_vm0, %v1432_v63 }
  0x2a   :  { %213 = vperm.xlu2 %1489, %v87_v20  }
  0x2b   :  { %208 = vperm.xlu1 %1488, %v86_v21   ;;  %143 = vperm.xlu0 %1487, %v73_v22   ;;  %v1426_v22 = vld [vmem:[%s2208_s1 + $0x48] sm:$0xff] }
  0x2c   :  { %1275 = vmatmul.msk.bf16.gmra.mxu0 %vm348_vm0, %v1419_v23  ;;  %v586_v23 = vld [vmem:[%s2211_s4 + $0xa0] sm:$0xff] }
  0x32   :  { %198 = vperm.xlu2 %1489, %v84_v24   ;;  %v589_v24 = vld [vmem:[%s2211_s4 + $0xb8] sm:$0xff] }
  0x33   :  { %133 = vperm.xlu1 %1488, %v71_v25   ;;  %128 = vperm.xlu0 %1487, %v70_v26  }
  0x3a   :  { %123 = vperm.xlu2 %1489, %v69_v27   ;;  %v567_v27 = vld [vmem:[%s2211_s4 + $0x8] sm:$0xff] }
  0x3b   :  { %203 = vperm.xlu0 %1487, %v85_v28   ;;  %118 = vperm.xlu1 %1488, %v68_v29  }
  0x3c   :  { %1276 = vmatmul.msk.bf16.gmra.mxu0 %vm348_vm0, %v1420_v30  ;;  %v585_v30 = vld [vmem:[%s2211_s4 + $0x98] sm:$0xff] }
  0x42   :  { %108 = vperm.xlu2 %1489, %v66_v31   ;;  %v584_v31 = vld [vmem:[%s2211_s4 + $0x90] sm:$0xff] }
  0x43   :  { %188 = vperm.xlu0 %1487, %v82_v32   ;;  %193 = vperm.xlu1 %1488, %v83_v33   ;;  %v588_v33 = vld [vmem:[%s2211_s4 + $0xb0] sm:$0xff] }
  0x4a   :  { %183 = vperm.xlu2 %1489, %v81_v39   ;;  %v583_v39 = vld [vmem:[%s2211_s4 + $0x88] sm:$0xff] }
  0x4b   :  { %178 = vperm.xlu1 %1488, %v80_v34   ;;  %113 = vperm.xlu0 %1487, %v67_v35  }
  0x4c   :  { %1277 = vmatmul.msk.bf16.gmra.mxu0 %vm348_vm0, %v1421_v36 }
  0x52   :  { %670 = vperm.xlu2 %1489, %v580_v43  }
  0x53   :  { %103 = vperm.xlu1 %1488, %v65_v37   ;;  %98 = vperm.xlu0 %1487, %v64_v38   ;;  %v1427_v37 = vld [vmem:[%s2208_s1 + $0x50] sm:$0xff]  ;;  %v1145_v38 = vld [vmem:[%s2213_s6] sm:$0xff]  ;;  %s1192_s6 = sshll.u32 %s2214_s7, 4  ;;  %s1193_s6 = int_to_ptr.hbm [resolvable:$true] %s1192_s6 }
  0x5a   :  { %665 = vperm.xlu2 %1489, %v579_v50  }
  0x5b   :  { %660 = vperm.xlu1 %1488, %v578_v41   ;;  %675 = vperm.xlu0 %1487, %v581_v42   ;;  %v587_v41 = vld [vmem:[%s2211_s4 + $0xa8] sm:$0xff] }
  0x5c   :  { %1278 = vmatmul.msk.bf16.gmra.mxu0 %vm348_vm0, %v1422_v40  ;;  %v1699_v46 = vpop.permute.xlu2 %238 }
  0x62   :  { %640 = vperm.xlu2 %1489, %v574_v54  }
  0x63   :  { %655 = vperm.xlu1 %1488, %v577_v44   ;;  %650 = vperm.xlu0 %1487, %v576_v45  }
  0x64   :  { %v1727_v55 = vpop.permute.xlu2 %243 }
  0x6a   :  { %635 = vperm.xlu2 %1489, %v573_v61  }
  0x6b   :  { %630 = vperm.xlu1 %1488, %v572_v48   ;;  %645 = vperm.xlu0 %1487, %v575_v49   ;;  %v582_v49 = vld [vmem:[%s2211_s4 + $0x80] sm:$0xff] }
  0x6c   :  { %1279 = vmatmul.msk.bf16.gmra.mxu0 %vm348_vm0, %v1423_v47  ;;  %v1745_v62 = vpop.permute.xlu2 %228 }
  0x72   :  { %620 = vperm.xlu2 %1489, %v570_v4  }
  0x73   :  { %755 = vperm.xlu1 %1488, %v597_v52   ;;  %750 = vperm.xlu0 %1487, %v596_v53  }
  0x74   :  { %v1769_v7 = vpop.permute.xlu2 %153 }
  0x75   :  { %v1729_v56 = vpop.permute.xlu0 %248  ;;  %v1731_v57 = vpop.permute.xlu1 %168 }
  0x7a   :  { %745 = vperm.xlu2 %1489, %v595_v12  }
  0x7b   :  { %740 = vperm.xlu1 %1488, %v594_v59   ;;  %625 = vperm.xlu0 %1487, %v571_v60  }
  0x7c   :  { %1280 = vmatmul.msk.bf16.gmra.mxu0 %vm348_vm0, %v1424_v58  ;;  %v1790_v15 = vpop.permute.xlu2 %138  ;;  %v1428_v58 = vld [vmem:[%s2208_s1 + $0x58] sm:$0xff] }
  0x7d   :  { %v1751_v0 = vpop.permute.xlu0 %253  ;;  %v1753_v1 = vpop.permute.xlu1 %173 }
  0x82   :  { %730 = vperm.xlu2 %1489, %v592_v19  }
  0x83   :  { %615 = vperm.xlu1 %1488, %v569_v2   ;;  %610 = vperm.xlu0 %1487, %v568_v3  }
  0x84   :  { %v1816_v26 = vpop.permute.xlu2 %213 }
  0x85   :  { %v1765_v5 = vpop.permute.xlu1 %163  ;;  %v1767_v6 = vpop.permute.xlu0 %158 }
  0x89   :  { %v1780_v11 = vpop.f32.mrf.mxu0 }
  0x8a   :  { %605 = vperm.xlu2 %1489, %v567_v27  }
  0x8b   :  { %600 = vperm.xlu1 %1488, %v566_v9   ;;  %735 = vperm.xlu0 %1487, %v593_v10  }
  0x8c   :  { %1281 = vmatmul.msk.bf16.gmra.mxu0 %vm348_vm0, %v1425_v8  ;;  %v1835_v34 = vpop.permute.xlu2 %198 }
  0x8d   :  { %v1786_v13 = vpop.permute.xlu0 %233  ;;  %v1788_v14 = vpop.permute.xlu1 %148 }
  0x91   :  { %v1798_v18 = vpop.f32.mrf.mxu0 }
  0x92   :  { %710 = vperm.xlu2 %1489, %v588_v33  }
  0x93   :  { %725 = vperm.xlu1 %1488, %v591_v16   ;;  %720 = vperm.xlu0 %1487, %v590_v17  }
  0x94   :  { %v124_v44 = vpop.permute.xlu2 %123 }
  0x95   :  { %v1803_v20 = vpop.permute.xlu0 %218  ;;  %v1805_v21 = vpop.permute.xlu1 %223 }
  0x99   :  { %v411_v25 = vpop.f32.mrf.mxu0 }
  0x9a   :  { %705 = vperm.xlu2 %1489, %v587_v41  }
  0x9b   :  { %700 = vperm.xlu1 %1488, %v586_v23   ;;  %715 = vperm.xlu0 %1487, %v589_v24  }
  0x9c   :  { %1282 = vmatmul.msk.bf16.gmra.mxu0 %vm348_vm0, %v1426_v22  ;;  %v109_v59 = vpop.permute.xlu2 %108 }
  0x9d   :  { %v1822_v28 = vpop.permute.xlu1 %208  ;;  %v1824_v29 = vpop.permute.xlu0 %143  ;;  %v412_v61 = vadd.f32 %v411_v25, %v109_v59 }
  0x9f   :  { %v488_v4 = vmax.f32 %v412_v61, 0.0 }
  0xa1   :  { %v413_v32 = vpop.f32.mrf.mxu0 }
  0xa2   :  { %680 = vperm.xlu2 %1489, %v582_v49  }
  0xa3   :  { %695 = vperm.xlu1 %1488, %v585_v30   ;;  %690 = vperm.xlu0 %1487, %v584_v31  }
  0xa5   :  { %v134_v35 = vpop.permute.xlu1 %133  ;;  %v129_v36 = vpop.permute.xlu0 %128 }
  0xa9   :  { %v416_v40 = vpop.f32.mrf.mxu0 }
  0xab   :  { %1148 = vperm.xlu1 %1488, %v1145_v38   ;;  %685 = vperm.xlu0 %1487, %v583_v39  }
  0xac   :  { %1283 = vmatmul.msk.bf16.gmra.mxu0 %vm348_vm0, %v1427_v37 }
  0xad   :  { %v1850_v42 = vpop.permute.xlu0 %203  ;;  %v119_v43 = vpop.permute.xlu1 %118 }
  0xae   :  { %v417_v45 = vadd.f32 %v416_v40, %v119_v43  ;;  %v476_v40 = vpop.f32.mrf.mxu3 }
  0xb0   :  { %v490_v50 = vmax.f32 %v417_v45, 0.0 }
  0xb1   :  { %v418_v47 = vpop.f32.mrf.mxu0 }
  0xb2   :  { %v419_v48 = vadd.f32 %v418_v47, %v124_v44 }
  0xb4   :  { %v491_v51 = vmax.f32 %v419_v48, 0.0 }
  0xb5   :  { %v1855_v52 = vpop.permute.xlu0 %188  ;;  %v1857_v53 = vpop.permute.xlu1 %193 }
  0xb6   :  { %v1859_v54 = vpack.c.bf16 %v491_v51, %v490_v50  ;;  %v478_v43 = vpop.f32.mrf.mxu3 }
  0xb9   :  { %v421_v60 = vpop.f32.mrf.mxu0 }
  0xba   :  { %v422_v8 = vadd.f32 %v421_v60, %v129_v36 }
  0xbc   :  { %1284 = vmatmul.msk.bf16.gmra.mxu0 %vm348_vm0, %v1428_v58  ;;  %v492_v17 = vmax.f32 %v422_v8, 0.0 }
  0xbd   :  { %v1865_v63 = vpop.permute.xlu1 %178  ;;  %v114_v2 = vpop.permute.xlu0 %113 }
  0xbe   :  { %v414_v3 = vadd.f32 %v413_v32, %v114_v2  ;;  %v1429_v32 = vld [vmem:[%s2208_s1 + $0x60] sm:$0xff]  ;;  %v481_v47 = vpop.f32.mrf.mxu3 }
  0xbf   :  { %v482_v2 = vadd.f32 %v481_v47, %v1729_v56  ;;  %v1403_v47 = vld [vmem:[%s2210_s3 + $0xe0] sm:$0xf] }
  0xc0   :  { %v489_v9 = vmax.f32 %v414_v3, 0.0 }
  0xc1   :  { %v423_v10 = vpop.f32.mrf.mxu0 }
  0xc2   :  { %v424_v12 = vadd.f32 %v423_v10, %v134_v35  ;;  %v1867_v16 = vpack.c.bf16 %v489_v9, %v488_v4  ;;  %v479_v10 = vadd.f32 %v478_v43, %v1727_v55  ;;  %v184_v55 = vpop.permute.xlu2 %183 }
  0xc4   :  { %v493_v19 = vmax.f32 %v424_v12, 0.0 }
  0xc5   :  { %v104_v22 = vpop.permute.xlu1 %103  ;;  %v99_v23 = vpop.permute.xlu0 %98 }
  0xc6   :  { %v409_v24 = vadd.f32 %v1798_v18, %v104_v22  ;;  %v407_v25 = vadd.f32 %v1780_v11, %v99_v23  ;;  %v1871_v27 = vpack.c.bf16 %v493_v19, %v492_v17  ;;  %v1430_v18 = vld [vmem:[%s2208_s1 + $0x68] sm:$0xff]  ;;  %v515_v23 = vmax.f32 %v479_v10, 0.0 }
  0xc8   :  { %v487_v30 = vmax.f32 %v409_v24, 0.0  ;;  %v486_v31 = vmax.f32 %v407_v25, 0.0 }
  0xc9   :  { %v426_v33 = vpop.f32.mrf.mxu0 }
  0xca   :  { %v1876_v35 = vpack.c.bf16 %v487_v30, %v486_v31  ;;  %v427_v56 = vadd.f32 %v426_v33, %v1790_v15 }
  0xcc   :  { %1285 = vmatmul.msk.bf16.gmra.mxu0 %vm348_vm0, %v1429_v32  ;;  %v494_v25 = vmax.f32 %v427_v56, 0.0 }
  0xd1   :  { %v428_v36 = vpop.f32.mrf.mxu0 }
  0xd9   :  { %v431_v37 = vpop.f32.mrf.mxu0 }
  0xda   :  { %v432_v3 = vadd.f32 %v431_v37, %v1788_v14 }
  0xdc   :  { %1286 = vmatmul.msk.bf16.gmra.mxu0 %vm348_vm0, %v1430_v18  ;;  %v496_v17 = vmax.f32 %v432_v3, 0.0  ;;  %v1291_v18 = vld [vmem:[%s2210_s3] sm:$0xf] }
  0xe1   :  { %v433_v11 = vpop.f32.mrf.mxu0 }
  0xe2   :  { %v434_v59 = vadd.f32 %v433_v11, %v1769_v7  ;;  %v516_v7 = vmax.f32 %v482_v2, 0.0  ;;  %v1436_v11 = vld [vmem:[%s2210_s3 + $0x4] sm:$0xf0] }
  0xe9   :  { %v436_v38 = vpop.f32.mrf.mxu0 }
  0xea   :  { %v437_v50 = vadd.f32 %v436_v38, %v1767_v6  ;;  %v483_v6 = vpop.f32.mrf.mxu3 }
  0xeb   :  { %v484_v12 = vadd.f32 %v483_v6, %v1751_v0 }
  0xec   :  { %v498_v4 = vmax.f32 %v437_v50, 0.0 }
  0xed   :  { %v517_v14 = vmax.f32 %v484_v12, 0.0  ;;  %v1444_v12 = vld [vmem:[%s2210_s3 + $0x44] sm:$0xf0] }
  0xef   :  { %v533_v24 = vpack.c.bf16 %v517_v14, %v516_v7  ;;  %v1323_v7 = vld [vmem:[%s2210_s3 + $0x40] sm:$0xf] }
  0xf1   :  { %v438_v39 = vpop.f32.mrf.mxu0  ;;  %1007 = vmatpush.bf16.msra.mxu2 %v533_v24 }
  0xf2   :  { %v439_v48 = vadd.f32 %v438_v39, %v1765_v5  ;;  %v497_v5 = vmax.f32 %v434_v59, 0.0  ;;  %v1440_v59 = vld [vmem:[%s2210_s3 + $0x24] sm:$0xf0] }
  0xf4   :  { %v499_v60 = vmax.f32 %v439_v48, 0.0  ;;  %v523_v22 = vpack.c.bf16 %v497_v5, %v496_v17  ;;  %v1315_v5 = vld [vmem:[%s2210_s3 + $0x30] sm:$0xf] }
  0xf6   :  { %v524_v9 = vpack.c.bf16 %v499_v60, %v498_v4  ;;  %v1411_v60 = vld [vmem:[%s2210_s3 + $0xf0] sm:$0xf] }
  0xf9   :  { %v441_v41 = vpop.f32.mrf.mxu0 }
  0xfa   :  { %v442_v44 = vadd.f32 %v441_v41, %v1731_v57  ;;  %v429_v57 = vadd.f32 %v428_v36, %v1824_v29 }
  0xfc   :  { %v500_v51 = vmax.f32 %v442_v44, 0.0  ;;  %v495_v19 = vmax.f32 %v429_v57, 0.0 }
  0xfe   :  { %v522_v31 = vpack.c.bf16 %v495_v19, %v494_v25  ;;  %v1324_v19 = vor.u32 %v1444_v12, %v1323_v7  ;;  %v2054_v7 = vpop.permute.xlu2 %670 }
 0x101   :  { %v443_v45 = vpop.f32.mrf.mxu0 }
 0x102   :  { %v444_v49 = vadd.f32 %v443_v45, %v1753_v1  ;;  %v477_v1 = vadd.f32 %v476_v40, %v1699_v46  ;;  %v1299_v45 = vld [vmem:[%s2210_s3 + $0x10] sm:$0xf] }
 0x104   :  { %v501_v58 = vmax.f32 %v444_v49, 0.0  ;;  %v514_v29 = vmax.f32 %v477_v1, 0.0 }
 0x106   :  { %v525_v61 = vpack.c.bf16 %v501_v58, %v500_v51  ;;  %v532_v15 = vpack.c.bf16 %v515_v23, %v514_v29  ;;  %v1307_v58 = vld [vmem:[%s2210_s3 + $0x20] sm:$0xf] }
 0x107   :  { %v1308_v3 = vor.u32 %v1440_v59, %v1307_v58  ;;  %v1355_v58 = vld [vmem:[%s2210_s3 + $0x80] sm:$0xf]  ;;  %v1452_v59 = vld [vmem:[%s2210_s3 + $0x84] sm:$0xf0] }
 0x108   :  { %918 = vmatpush.bf16.msra.mxu1 %v525_v61  ;;  %1469 = vmatpush.bf16.msrb.mxu3 %v525_v61  ;;  %v1466_v61 = vld [vmem:[%s2210_s3 + $0xf4] sm:$0xf0] }
 0x109   :  { %v446_v8 = vpop.f32.mrf.mxu0  ;;  %1008 = vmatpush.bf16.msra.mxu2 %v532_v15  ;;  %v1412_v4 = vor.u32 %v1466_v61, %v1411_v60  ;;  %v1356_v60 = vor.u32 %v1452_v59, %v1355_v58  ;;  %v1441_v61 = vld [vmem:[%s2210_s3 + $0x34] sm:$0xf] }
 0x10a   :  { %v447_v46 = vadd.f32 %v446_v8, %v1865_v63  ;;  %v1442_v8 = vld [vmem:[%s2210_s3 + $0x34] sm:$0xf0] }
 0x10b   :  { %v1316_v6 = vor.u32 %v1442_v8, %v1315_v5  ;;  %v1443_v8 = vld [vmem:[%s2210_s3 + $0x44] sm:$0xf] }
 0x10c   :  { %919 = vmatpush.bf16.msra.mxu1 %v524_v9  ;;  %1470 = vmatpush.bf16.msrb.mxu3 %v524_v9  ;;  %v502_v32 = vmax.f32 %v447_v46, 0.0 }
 0x110   :  { %920 = vmatpush.bf16.msra.mxu1 %v523_v22  ;;  %1471 = vmatpush.bf16.msrb.mxu3 %v523_v22 }
 0x111   :  { %v448_v30 = vpop.f32.mrf.mxu0 }
 0x112   :  { %v449_v0 = vadd.f32 %v448_v30, %v184_v55 }
 0x114   :  { %v503_v33 = vmax.f32 %v449_v0, 0.0  ;;  %921 = vmatpush.bf16.msra.mxu1 %v522_v31  ;;  %1472 = vmatpush.bf16.msrb.mxu3 %v522_v31 }
 0x116   :  { %v1896_v36 = vpack.c.bf16 %v503_v33, %v502_v32 }
 0x118   :  { %922 = vmatpush.bf16.msra.mxu1 %v1871_v27  ;;  %1473 = vmatpush.bf16.msrb.mxu3 %v1871_v27  ;;  %v1395_v27 = vld [vmem:[%s2210_s3 + $0xd0] sm:$0xf] }
 0x119   :  { %v451_v63 = vpop.f32.mrf.mxu0 }
 0x11a   :  { %v452_v37 = vadd.f32 %v451_v63, %v1855_v52  ;;  %v1292_v52 = vor.u32 %v1436_v11, %v1291_v18  ;;  %v1293_v63 = vld [vmem:[%s2210_s3 + $0x8] sm:$0xf0]  ;;  %v1461_v18 = vld [vmem:[%s2210_s3 + $0xd4] sm:$0xf] }
 0x11c   :  { %923 = vmatpush.bf16.msra.mxu1 %v1859_v54  ;;  %1474 = vmatpush.bf16.msrb.mxu3 %v1859_v54  ;;  %v1462_v54 = vld [vmem:[%s2210_s3 + $0xd4] sm:$0xf0]  ;;  %v504_v41 = vmax.f32 %v452_v37, 0.0  ;;  %v1397_v37 = vld [vmem:[%s2210_s3 + $0xd8] sm:$0xf0] }
 0x11d   :  { %v1396_v40 = vor.u32 %v1462_v54, %v1395_v27  ;;  %v1400_v27 = vor.u32 %v1461_v18, %v1397_v37  ;;  %v1339_v54 = vld [vmem:[%s2210_s3 + $0x60] sm:$0xf] }
 0x120   :  { %924 = vmatpush.bf16.msra.mxu1 %v1867_v16  ;;  %1475 = vmatpush.bf16.msrb.mxu3 %v1867_v16 }
 0x121   :  { %v453_v38 = vpop.f32.mrf.mxu0 }
 0x122   :  { %v454_v39 = vadd.f32 %v453_v38, %v1857_v53  ;;  %v1438_v53 = vld [vmem:[%s2210_s3 + $0x14] sm:$0xf0]  ;;  %v1448_v38 = vld [vmem:[%s2210_s3 + $0x64] sm:$0xf0] }
 0x123   :  { %v1300_v49 = vor.u32 %v1438_v53, %v1299_v45  ;;  %v1450_v45 = vld [vmem:[%s2210_s3 + $0x74] sm:$0xf0] }
 0x124   :  { %v505_v43 = vmax.f32 %v454_v39, 0.0  ;;  %925 = vmatpush.bf16.msra.mxu1 %v1876_v35  ;;  %1476 = vmatpush.bf16.msrb.mxu3 %v1876_v35  ;;  %v1464_v35 = vld [vmem:[%s2210_s3 + $0xe4] sm:$0xf0]  ;;  %v1340_v39 = vor.u32 %v1448_v38, %v1339_v54  ;;  %v1349_v54 = vld [vmem:[%s2210_s3 + $0x78] sm:$0xf0] }
 0x125   :  { %v1404_v50 = vor.u32 %v1464_v35, %v1403_v47  ;;  %v1439_v47 = vld [vmem:[%s2210_s3 + $0x24] sm:$0xf]  ;;  %v1309_v35 = vld [vmem:[%s2210_s3 + $0x28] sm:$0xf0] }
 0x126   :  { %v1920_v16 = vpack.c.bf16 %v505_v43, %v504_v41  ;;  %v1405_v41 = vld [vmem:[%s2210_s3 + $0xe8] sm:$0xf0] }
 0x127   :  { %926 = vmatmul.bf16.vlgmr.msra.gmra.mxu1 %v1292_v52  ;;  %991 = vmatmul.bf16.vlgmr.msrb.gmra.mxu3 %v1396_v40  ;;  %v1437_v52 = vld [vmem:[%s2210_s3 + $0x14] sm:$0xf]  ;;  %v1463_v40 = vld [vmem:[%s2210_s3 + $0xe4] sm:$0xf] }
 0x128   :  { %1477 = vmatpush.bf16.msra.mxu3 %v533_v24 }
 0x129   :  { %v456_v44 = vpop.f32.mrf.mxu0 }
 0x12c   :  { %1478 = vmatpush.bf16.msra.mxu3 %v532_v15 }
 0x131   :  { %v458_v48 = vpop.f32.mrf.mxu0 }
 0x132   :  { %v459_v30 = vadd.f32 %v458_v48, %v1850_v42  ;;  %v1446_v42 = vld [vmem:[%s2210_s3 + $0x54] sm:$0xf0]  ;;  %v1465_v48 = vld [vmem:[%s2210_s3 + $0xf4] sm:$0xf] }
 0x137   :  { %931 = vmatmul.bf16.gmra.mxu1 %v1300_v49  ;;  %996 = vmatmul.bf16.gmra.mxu3 %v1404_v50  ;;  %v1413_v49 = vld [vmem:[%s2210_s3 + $0xf8] sm:$0xf0]  ;;  %v1312_v50 = vor.u32 %v1439_v47, %v1309_v35  ;;  %v1357_v47 = vld [vmem:[%s2210_s3 + $0x88] sm:$0xf0] }
 0x139   :  { %v461_v51 = vpop.f32.mrf.mxu0 }
 0x13a   :  { %v462_v46 = vadd.f32 %v461_v51, %v1822_v28  ;;  %v1331_v28 = vld [vmem:[%s2210_s3 + $0x50] sm:$0xf]  ;;  %v1416_v51 = vor.u32 %v1465_v48, %v1413_v49 }
 0x13b   :  { %v1332_v33 = vor.u32 %v1446_v42, %v1331_v28 }
 0x13c   :  { %v508_v31 = vmax.f32 %v462_v46, 0.0  ;;  %v1458_v46 = vld [vmem:[%s2210_s3 + $0xb4] sm:$0xf0] }
 0x141   :  { %v463_v2 = vpop.f32.mrf.mxu0 }
 0x147   :  { %936 = vmatmul.bf16.gmra.mxu1 %v1308_v3  ;;  %1001 = vmatmul.bf16.gmra.mxu3 %v1412_v4  ;;  %v1363_v4 = vld [vmem:[%s2210_s3 + $0x90] sm:$0xf] }
 0x149   :  { %v466_v57 = vpop.f32.mrf.mxu0 }
 0x14a   :  { %v467_v22 = vadd.f32 %v466_v57, %v1803_v20  ;;  %v507_v20 = vmax.f32 %v459_v30, 0.0  ;;  %v1454_v57 = vld [vmem:[%s2210_s3 + $0x94] sm:$0xf0] }
 0x14b   :  { %v1364_v5 = vor.u32 %v1454_v57, %v1363_v4 }
 0x14c   :  { %v510_v55 = vmax.f32 %v467_v22, 0.0 }
 0x151   :  { %v468_v1 = vpop.f32.mrf.mxu0 }
 0x152   :  { %v469_v17 = vadd.f32 %v468_v1, %v1805_v21  ;;  %v1325_v1 = vld [vmem:[%s2210_s3 + $0x48] sm:$0xf0] }
 0x154   :  { %v511_v24 = vmax.f32 %v469_v17, 0.0 }
 0x156   :  { %v530_v0 = vpack.c.bf16 %v511_v24, %v510_v55 }
 0x157   :  { %941 = vmatmul.bf16.gmra.mxu1 %v1316_v6  ;;  %v1328_v6 = vor.u32 %v1443_v8, %v1325_v1  ;;  %v1453_v8 = vld [vmem:[%s2210_s3 + $0x94] sm:$0xf]  ;;  %v1365_v1 = vld [vmem:[%s2210_s3 + $0x98] sm:$0xf0] }
 0x159   :  { %v471_v9 = vpop.f32.mrf.mxu0 }
 0x15a   :  { %v472_v10 = vadd.f32 %v471_v9, %v1745_v62  ;;  %v464_v62 = vadd.f32 %v463_v2, %v1816_v26  ;;  %v1317_v2 = vld [vmem:[%s2210_s3 + $0x38] sm:$0xf0]  ;;  %v1371_v9 = vld [vmem:[%s2210_s3 + $0xa0] sm:$0xf] }
 0x15b   :  { %v1320_v3 = vor.u32 %v1441_v61, %v1317_v2 }
 0x15c   :  { %v512_v29 = vmax.f32 %v472_v10, 0.0  ;;  %v509_v21 = vmax.f32 %v464_v62, 0.0  ;;  %v1456_v10 = vld [vmem:[%s2210_s3 + $0xa4] sm:$0xf0]  ;;  %v2066_v62 = vpop.permute.xlu2 %665 }
 0x15d   :  { %v1372_v12 = vor.u32 %v1456_v10, %v1371_v9 }
 0x15e   :  { %v529_v15 = vpack.c.bf16 %v509_v21, %v508_v31 }
 0x161   :  { %v473_v56 = vpop.f32.mrf.mxu0 }
 0x162   :  { %v474_v14 = vadd.f32 %v473_v56, %v1786_v13  ;;  %v457_v13 = vadd.f32 %v456_v44, %v1835_v34  ;;  %v1435_v34 = vld [vmem:[%s2210_s3 + $0x4] sm:$0xf]  ;;  %v1347_v44 = vld [vmem:[%s2210_s3 + $0x70] sm:$0xf]  ;;  %v2056_v56 = vpop.permute.xlu1 %660 }
 0x163   :  { %v1296_v11 = vor.u32 %v1435_v34, %v1293_v63  ;;  %v1348_v53 = vor.u32 %v1450_v45, %v1347_v44  ;;  %v1387_v34 = vld [vmem:[%s2210_s3 + $0xc0] sm:$0xf]  ;;  %v1460_v63 = vld [vmem:[%s2210_s3 + $0xc4] sm:$0xf0] }
 0x164   :  { %v513_v23 = vmax.f32 %v474_v14, 0.0  ;;  %v506_v26 = vmax.f32 %v457_v13, 0.0  ;;  %v1445_v14 = vld [vmem:[%s2210_s3 + $0x54] sm:$0xf]  ;;  %v2078_v13 = vpop.permute.xlu2 %640  ;;  %v1388_v37 = vor.u32 %v1460_v63, %v1387_v34 }
 0x166   :  { %v531_v25 = vpack.c.bf16 %v513_v23, %v512_v29  ;;  %v528_v32 = vpack.c.bf16 %v507_v20, %v506_v26  ;;  %v2064_v23 = vpop.permute.xlu0 %675  ;;  %v1447_v20 = vld [vmem:[%s2210_s3 + $0x64] sm:$0xf] }
 0x167   :  { %946 = vmatmul.bf16.gmra.mxu1 %v1324_v19  ;;  %v1333_v19 = vld [vmem:[%s2210_s3 + $0x58] sm:$0xf0] }
 0x168   :  { %1009 = vmatpush.bf16.msra.mxu2 %v531_v25  ;;  %1479 = vmatpush.bf16.msra.mxu3 %v531_v25  ;;  %v1336_v29 = vor.u32 %v1445_v14, %v1333_v19  ;;  %v1379_v25 = vld [vmem:[%s2210_s3 + $0xb0] sm:$0xf] }
 0x169   :  { %v1380_v30 = vor.u32 %v1458_v46, %v1379_v25 }
 0x16a   :  { %v2068_v24 = vpop.permute.xlu1 %655 }
 0x16c   :  { %1010 = vmatpush.bf16.msra.mxu2 %v530_v0  ;;  %1480 = vmatpush.bf16.msra.mxu3 %v530_v0 }
 0x16e   :  { %v2076_v0 = vpop.permute.xlu0 %650 }
 0x170   :  { %1011 = vmatpush.bf16.msra.mxu2 %v529_v15  ;;  %1481 = vmatpush.bf16.msra.mxu3 %v529_v15  ;;  %v1341_v15 = vld [vmem:[%s2210_s3 + $0x68] sm:$0xf0] }
 0x171   :  { %v1344_v26 = vor.u32 %v1447_v20, %v1341_v15 }
 0x172   :  { %v2080_v31 = vpop.permute.xlu1 %630 }
 0x174   :  { %1012 = vmatpush.bf16.msra.mxu2 %v528_v32  ;;  %1482 = vmatpush.bf16.msra.mxu3 %v528_v32 }
 0x176   :  { %v2090_v32 = vpop.permute.xlu0 %645 }
 0x177   :  { %951 = vmatmul.bf16.gmra.mxu1 %v1332_v33  ;;  %v2092_v33 = vpop.permute.xlu2 %635 }
 0x178   :  { %1013 = vmatpush.bf16.msra.mxu2 %v1920_v16  ;;  %1483 = vmatpush.bf16.msra.mxu3 %v1920_v16  ;;  %v1408_v16 = vor.u32 %v1463_v40, %v1405_v41 }
 0x17a   :  { %v2100_v18 = vpop.permute.xlu1 %755 }
 0x17c   :  { %1014 = vmatpush.bf16.msra.mxu2 %v1896_v36  ;;  %1484 = vmatpush.bf16.msra.mxu3 %v1896_v36  ;;  %v1301_v36 = vld [vmem:[%s2210_s3 + $0x18] sm:$0xf0] }
 0x17d   :  { %v1304_v43 = vor.u32 %v1437_v52, %v1301_v36 }
 0x17f   :  { %1015 = vmatmul.bf16.vlgmr.msra.gmra.mxu2 %v1296_v11  ;;  %1080 = vmatmul.bf16.vlgmr.msra.gmra.mxu3 %v1400_v27  ;;  %v1449_v27 = vld [vmem:[%s2210_s3 + $0x74] sm:$0xf]  ;;  %v2110_v52 = vpop.permute.xlu2 %620 }
 0x180   :  { %v1352_v36 = vor.u32 %v1449_v27, %v1349_v54  ;;  %v1455_v27 = vld [vmem:[%s2210_s3 + $0xa4] sm:$0xf]  ;;  %v1373_v54 = vld [vmem:[%s2210_s3 + $0xa8] sm:$0xf0] }
 0x182   :  { %v741_v40 = vpop.permute.xlu1 %740 }
 0x187   :  { %956 = vmatmul.bf16.gmra.mxu1 %v1340_v39  ;;  %v2108_v39 = vpop.permute.xlu0 %750  ;;  %v746_v44 = vpop.permute.xlu2 %745 }
 0x18a   :  { %v616_v45 = vpop.permute.xlu1 %615 }
 0x18f   :  { %1020 = vmatmul.bf16.gmra.mxu2 %v1304_v43  ;;  %1085 = vmatmul.bf16.gmra.mxu3 %v1408_v16  ;;  %v2114_v16 = vpop.permute.xlu0 %625 }
 0x192   :  { %v601_v58 = vpop.permute.xlu1 %600 }
 0x197   :  { %961 = vmatmul.bf16.gmra.mxu1 %v1348_v53  ;;  %v1451_v53 = vld [vmem:[%s2210_s3 + $0x84] sm:$0xf] }
 0x198   :  { %v1360_v48 = vor.u32 %v1451_v53, %v1357_v47 }
 0x19f   :  { %1025 = vmatmul.bf16.gmra.mxu2 %v1312_v50  ;;  %1090 = vmatmul.bf16.gmra.mxu3 %v1416_v51  ;;  %v611_v50 = vpop.permute.xlu0 %610  ;;  %v731_v51 = vpop.permute.xlu2 %730 }
 0x1a4   :  { %v927_v22 = vpop.f32.mrf.mxu1 }
 0x1a5   :  { %v928_v59 = vadd.f32 %v927_v22, %v601_v58  ;;  %v1376_v58 = vor.u32 %v1455_v27, %v1373_v54 }
 0x1a7   :  { %966 = vmatmul.bf16.gmra.mxu1 %v1356_v60  ;;  %v736_v57 = vpop.permute.xlu0 %735 }
 0x1aa   :  { %v992_v17 = vpop.f32.mrf.mxu3 }
 0x1ac   :  { %v929_v21 = vpop.f32.mrf.mxu1 }
 0x1af   :  { %1030 = vmatmul.bf16.gmra.mxu2 %v1320_v3  ;;  %v993_v3 = vadd.f32 %v992_v17, %v731_v51 }
 0x1b2   :  { %v994_v55 = vpop.f32.mrf.mxu3 }
 0x1b3   :  { %v995_v9 = vadd.f32 %v994_v55, %v736_v57 }
 0x1b4   :  { %v932_v42 = vpop.f32.mrf.mxu1 }
 0x1b7   :  { %971 = vmatmul.bf16.gmra.mxu1 %v1364_v5  ;;  %v606_v5 = vpop.permute.xlu2 %605 }
 0x1ba   :  { %v2088_v28 = vpop.f32.mrf.mxu3 }
 0x1bc   :  { %v934_v38 = vpop.f32.mrf.mxu1 }
 0x1bf   :  { %1035 = vmatmul.bf16.gmra.mxu2 %v1328_v6  ;;  %v930_v6 = vadd.f32 %v929_v21, %v606_v5  ;;  %v1381_v5 = vld [vmem:[%s2210_s3 + $0xb8] sm:$0xf0] }
 0x1c2   :  { %v999_v11 = vpop.f32.mrf.mxu3 }
 0x1c3   :  { %v1000_v53 = vadd.f32 %v999_v11, %v746_v44 }
 0x1c4   :  { %v937_v43 = vpop.f32.mrf.mxu1 }
 0x1c5   :  { %v938_v57 = vadd.f32 %v937_v43, %v2110_v52 }
 0x1c7   :  { %976 = vmatmul.bf16.gmra.mxu1 %v1372_v12 }
 0x1ca   :  { %v2112_v41 = vpop.f32.mrf.mxu3 }
 0x1cc   :  { %v939_v49 = vpop.f32.mrf.mxu1 }
 0x1cf   :  { %1040 = vmatmul.bf16.gmra.mxu2 %v1336_v29  ;;  %v1368_v29 = vor.u32 %v1453_v8, %v1365_v1  ;;  %v940_v8 = vadd.f32 %v939_v49, %v2114_v16  ;;  %v1389_v16 = vld [vmem:[%s2210_s3 + $0xc8] sm:$0xf0] }
 0x1d2   :  { %v2122_v35 = vpop.f32.mrf.mxu3 }
 0x1d4   :  { %v942_v4 = vpop.f32.mrf.mxu1 }
 0x1d7   :  { %981 = vmatmul.bf16.gmra.mxu1 %v1380_v30 }
 0x1dc   :  { %v944_v34 = vpop.f32.mrf.mxu1 }
 0x1dd   :  { %v945_v49 = vadd.f32 %v944_v34, %v2092_v33 }
 0x1df   :  { %1045 = vmatmul.bf16.gmra.mxu2 %v1344_v26  ;;  %v933_v26 = vadd.f32 %v932_v42, %v611_v50 }
 0x1e7   :  { %986 = vmatmul.bf16.gmra.mxu1 %v1388_v37  ;;  %v998_v37 = vadd.f32 %v2088_v28, %v741_v40 }
 0x1ef   :  { %1050 = vmatmul.bf16.gmra.mxu2 %v1352_v36  ;;  %v935_v36 = vadd.f32 %v934_v38, %v616_v45  ;;  %v1457_v45 = vld [vmem:[%s2210_s3 + $0xb4] sm:$0xf] }
 0x1ff   :  { %1055 = vmatmul.bf16.gmra.mxu2 %v1360_v48 }
 0x202   :  { %v1016_v60 = vpop.f32.mrf.mxu2  ;;  %v1081_v61 = vpop.f32.mrf.mxu3 }
 0x203   :  { %v1017_v2 = vadd.f32 %v1016_v60, %v928_v59  ;;  %v1082_v10 = vadd.f32 %v1081_v61, %v993_v3  ;;  %v947_v59 = vpop.f32.mrf.mxu1 }
 0x205   :  { %v1096_v17 = vmax.f32 %v1017_v2, 0.0  ;;  %v1122_v25 = vmax.f32 %v1082_v10, 0.0 }
 0x20a   :  { %v1018_v12 = vpop.f32.mrf.mxu2  ;;  %v1083_v14 = vpop.f32.mrf.mxu3 }
 0x20b   :  { %v1019_v19 = vadd.f32 %v1018_v12, %v930_v6  ;;  %v1084_v22 = vadd.f32 %v1083_v14, %v995_v9  ;;  %v2146_v44 = vpop.f32.mrf.mxu1  ;;  %v1384_v9 = vor.u32 %v1457_v45, %v1381_v5  ;;  %v943_v14 = vadd.f32 %v942_v4, %v2080_v31 }
 0x20c   :  { %v948_v31 = vadd.f32 %v947_v59, %v2078_v13 }
 0x20d   :  { %v1097_v46 = vmax.f32 %v1019_v19, 0.0  ;;  %v1123_v30 = vmax.f32 %v1084_v22, 0.0 }
 0x20f   :  { %v2130_v20 = vpack.c.bf16 %v1123_v30, %v1122_v25  ;;  %1060 = vmatmul.bf16.gmra.mxu2 %v1368_v29  ;;  %v2132_v15 = vpack.c.bf16 %v1097_v46, %v1096_v17  ;;  %v1459_v29 = vld [vmem:[%s2210_s3 + $0xc4] sm:$0xf] }
 0x210   :  { %v1392_v30 = vor.u32 %v1459_v29, %v1389_v16 }
 0x212   :  { %v1021_v63 = vpop.f32.mrf.mxu2  ;;  %v1086_v21 = vpop.f32.mrf.mxu3 }
 0x213   :  { %v1022_v55 = vadd.f32 %v1021_v63, %v933_v26  ;;  %v1087_v47 = vadd.f32 %v1086_v21, %v998_v37  ;;  %v952_v43 = vpop.f32.mrf.mxu1 }
 0x215   :  { %v1098_v60 = vmax.f32 %v1022_v55, 0.0  ;;  %v1124_v61 = vmax.f32 %v1087_v47, 0.0 }
 0x21a   :  { %v1023_v48 = vpop.f32.mrf.mxu2  ;;  %v1088_v51 = vpop.f32.mrf.mxu3 }
 0x21b   :  { %v1024_v42 = vadd.f32 %v1023_v48, %v935_v36  ;;  %v1089_v50 = vadd.f32 %v1088_v51, %v1000_v53  ;;  %v954_v17 = vpop.f32.mrf.mxu1  ;;  %v2168_v48 = vpop.permute.xlu0 %720 }
 0x21d   :  { %v1099_v28 = vmax.f32 %v1024_v42, 0.0  ;;  %v1125_v40 = vmax.f32 %v1089_v50, 0.0  ;;  %v2170_v42 = vpop.permute.xlu2 %710 }
 0x21f   :  { %v2141_v2 = vpack.c.bf16 %v1099_v28, %v1098_v60  ;;  %v2143_v3 = vpack.c.bf16 %v1125_v40, %v1124_v61  ;;  %1065 = vmatmul.bf16.gmra.mxu2 %v1376_v58 }
 0x222   :  { %v1026_v38 = vpop.f32.mrf.mxu2 }
 0x223   :  { %v1027_v11 = vadd.f32 %v1026_v38, %v938_v57  ;;  %v957_v37 = vpop.f32.mrf.mxu1  ;;  %v2172_v60 = vpop.permute.xlu0 %715 }
 0x225   :  { %v1100_v10 = vmax.f32 %v1027_v11, 0.0  ;;  %v2174_v13 = vpop.permute.xlu2 %705  ;;  %v958_v11 = vadd.f32 %v957_v37, %v2056_v56 }
 0x22a   :  { %v1028_v1 = vpop.f32.mrf.mxu2 }
 0x22b   :  { %v1029_v6 = vadd.f32 %v1028_v1, %v940_v8  ;;  %v959_v54 = vpop.f32.mrf.mxu1  ;;  %v955_v8 = vadd.f32 %v954_v17, %v2068_v24 }
 0x22c   :  { %v960_v28 = vadd.f32 %v959_v54, %v2066_v62 }
 0x22d   :  { %v1101_v12 = vmax.f32 %v1029_v6, 0.0  ;;  %v681_v62 = vpop.permute.xlu2 %680 }
 0x22f   :  { %v2155_v52 = vpack.c.bf16 %v1101_v12, %v1100_v10  ;;  %1070 = vmatmul.bf16.gmra.mxu2 %v1384_v9  ;;  %v691_v10 = vpop.permute.xlu0 %690  ;;  %v953_v12 = vadd.f32 %v952_v43, %v2076_v0  ;;  %v1091_v0 = vpop.f32.mrf.mxu3 }
 0x232   :  { %v1031_v19 = vpop.f32.mrf.mxu2 }
 0x233   :  { %v1032_v22 = vadd.f32 %v1031_v19, %v943_v14  ;;  %v962_v53 = vpop.f32.mrf.mxu1 }
 0x234   :  { %v963_v61 = vadd.f32 %v962_v53, %v2054_v7 }
 0x235   :  { %v1102_v26 = vmax.f32 %v1032_v22, 0.0 }
 0x23a   :  { %v1033_v25 = vpop.f32.mrf.mxu2 }
 0x23b   :  { %v1034_v46 = vadd.f32 %v1033_v25, %v945_v49  ;;  %v964_v33 = vpop.f32.mrf.mxu1 }
 0x23c   :  { %v965_v40 = vadd.f32 %v964_v33, %v2064_v23  ;;  %v950_v23 = vadd.f32 %v2146_v44, %v2090_v32 }
 0x23d   :  { %v1103_v63 = vmax.f32 %v1034_v46, 0.0 }
 0x23f   :  { %v2165_v21 = vpack.c.bf16 %v1103_v63, %v1102_v26  ;;  %1075 = vmatmul.bf16.gmra.mxu2 %v1392_v30  ;;  %v686_v63 = vpop.permute.xlu0 %685 }
 0x242   :  { %v1036_v4 = vpop.f32.mrf.mxu2 }
 0x243   :  { %v1037_v55 = vadd.f32 %v1036_v4, %v948_v31  ;;  %v967_v50 = vpop.f32.mrf.mxu1 }
 0x244   :  { %v968_v29 = vadd.f32 %v967_v50, %v681_v62 }
 0x245   :  { %v1104_v4 = vmax.f32 %v1037_v55, 0.0  ;;  %v1003_v55 = vadd.f32 %v2112_v41, %v2108_v39 }
 0x24a   :  { %v1038_v27 = vpop.f32.mrf.mxu2 }
 0x24b   :  { %v969_v59 = vpop.f32.mrf.mxu1  ;;  %v1039_v24 = vadd.f32 %v1038_v27, %v950_v23 }
 0x24c   :  { %v970_v31 = vadd.f32 %v969_v59, %v686_v63 }
 0x24d   :  { %v1105_v43 = vmax.f32 %v1039_v24, 0.0 }
 0x24f   :  { %v1132_v44 = vpack.c.bf16 %v1105_v43, %v1104_v4 }
 0x252   :  { %v1041_v36 = vpop.f32.mrf.mxu2 }
 0x253   :  { %v972_v22 = vpop.f32.mrf.mxu1  ;;  %v1042_v56 = vadd.f32 %v1041_v36, %v953_v12 }
 0x254   :  { %v973_v33 = vadd.f32 %v972_v22, %v691_v10 }
 0x255   :  { %v1106_v30 = vmax.f32 %v1042_v56, 0.0 }
 0x25a   :  { %v1043_v47 = vpop.f32.mrf.mxu2 }
 0x25b   :  { %v1044_v14 = vadd.f32 %v1043_v47, %v955_v8  ;;  %v974_v37 = vpop.f32.mrf.mxu1  ;;  %v1093_v47 = vpop.f32.mrf.mxu3 }
 0x25d   :  { %v1107_v17 = vmax.f32 %v1044_v14, 0.0 }
 0x25f   :  { %v1133_v26 = vpack.c.bf16 %v1107_v17, %v1106_v30 }
 0x262   :  { %v1046_v34 = vpop.f32.mrf.mxu2 }
 0x263   :  { %v1047_v1 = vadd.f32 %v1046_v34, %v958_v11  ;;  %v1005_v34 = vadd.f32 %v2122_v35, %v2100_v18  ;;  %v977_v59 = vpop.f32.mrf.mxu1 }
 0x265   :  { %v1108_v16 = vmax.f32 %v1047_v1, 0.0 }
 0x26a   :  { %v1048_v51 = vpop.f32.mrf.mxu2 }
 0x26b   :  { %v1049_v45 = vadd.f32 %v1048_v51, %v960_v28  ;;  %v1092_v28 = vadd.f32 %v1091_v0, %v1003_v55  ;;  %v979_v39 = vpop.f32.mrf.mxu1 }
 0x26c   :  { %v980_v22 = vadd.f32 %v979_v39, %v2174_v13 }
 0x26d   :  { %v1109_v7 = vmax.f32 %v1049_v45, 0.0 }
 0x26f   :  { %v1134_v25 = vpack.c.bf16 %v1109_v7, %v1108_v16 }
 0x272   :  { %v1051_v58 = vpop.f32.mrf.mxu2 }
 0x273   :  { %v1052_v57 = vadd.f32 %v1051_v58, %v963_v61  ;;  %v1094_v58 = vadd.f32 %v1093_v47, %v1005_v34  ;;  %v1144_v61 = vld [vmem:[%s2212_s5] sm:$0xff]  ;;  %s1517_s5 = smov [#allocation2]  }
 0x274   :  { %v1153_v4 = vunpack.c.h.b16 %v1144_v61  ;;  %s1190_s9 = sshll.u32 %s1517_s5, 4  ;;  %s1191_s9 = int_to_ptr.vmem [resolvable:$true] %s1190_s9 }
 0x275   :  { %v1110_v6 = vmax.f32 %v1052_v57, 0.0  ;;  %v1152_v57 = vunpack.c.l.b16 %v1144_v61 }
 0x27a   :  { %v1053_v38 = vpop.f32.mrf.mxu2 }
 0x27b   :  { %v1054_v5 = vadd.f32 %v1053_v38, %v965_v40  ;;  %v1127_v40 = vmax.f32 %v1094_v58, 0.0  ;;  %v1154_v38 = vpack.c.b16 %v1152_v57, %v1152_v57 }
 0x27d   :  { %v1111_v9 = vmax.f32 %v1054_v5, 0.0 }
 0x27f   :  { %v1135_v19 = vpack.c.bf16 %v1111_v9, %v1110_v6 }
 0x281   :  { %1158 = vmatpush.bf16.msrb.mxu3 %v1135_v19 }
 0x282   :  { %v1056_v49 = vpop.f32.mrf.mxu2 }
 0x283   :  { %v1057_v46 = vadd.f32 %v1056_v49, %v968_v29 }
 0x285   :  { %1159 = vmatpush.bf16.msrb.mxu3 %v1134_v25  ;;  %v1112_v36 = vmax.f32 %v1057_v46, 0.0 }
 0x289   :  { %1160 = vmatpush.bf16.msrb.mxu3 %v1133_v26 }
 0x28a   :  { %v1058_v32 = vpop.f32.mrf.mxu2 }
 0x28b   :  { %v1059_v54 = vadd.f32 %v1058_v32, %v970_v31  ;;  %v1155_v32 = vpack.c.b16 %v1153_v4, %v1153_v4 }
 0x28d   :  { %v1113_v53 = vmax.f32 %v1059_v54, 0.0  ;;  %1161 = vmatpush.bf16.msrb.mxu3 %v1132_v44 }
 0x28f   :  { %v2184_v27 = vpack.c.bf16 %v1113_v53, %v1112_v36 }
 0x291   :  { %1162 = vmatpush.bf16.msrb.mxu3 %v2165_v21  ;;  %v1126_v21 = vmax.f32 %v1092_v28, 0.0 }
 0x292   :  { %v1061_v51 = vpop.f32.mrf.mxu2 }
 0x293   :  { %v1062_v50 = vadd.f32 %v1061_v51, %v973_v33  ;;  %v1143_v35 = vpack.c.bf16 %v1127_v40, %v1126_v21 }
 0x295   :  { %1163 = vmatpush.bf16.msrb.mxu3 %v2155_v52  ;;  %v982_v52 = vpop.f32.mrf.mxu1  ;;  %v1114_v13 = vmax.f32 %v1062_v50, 0.0 }
 0x299   :  { %1164 = vmatpush.bf16.msrb.mxu3 %v2141_v2  ;;  %v726_v2 = vpop.permute.xlu1 %725 }
 0x29a   :  { %v1063_v18 = vpop.f32.mrf.mxu2 }
 0x29d   :  { %1165 = vmatpush.bf16.msrb.mxu3 %v2132_v15  ;;  %v984_v45 = vpop.f32.mrf.mxu1 }
 0x29e   :  { %v985_v12 = vadd.f32 %v984_v45, %v2172_v60 }
 0x2a0   :  { %1166 = vmatmul.bf16.vlgmr.msrb.gmra.mxu3 %v1154_v38 }
 0x2a1   :  { %1171 = vmatpush.bf16.msra.mxu3 %v1143_v35  ;;  %v701_v9 = vpop.permute.xlu1 %700 }
 0x2a2   :  { %v1066_v41 = vpop.f32.mrf.mxu2  ;;  %v978_v16 = vadd.f32 %v977_v59, %v701_v9 }
 0x2a4   :  { %v1067_v46 = vadd.f32 %v1066_v41, %v978_v16 }
 0x2a5   :  { %1172 = vmatpush.bf16.msra.mxu3 %v2143_v3  ;;  %v987_v1 = vpop.f32.mrf.mxu1  ;;  %v983_v3 = vadd.f32 %v982_v52, %v2170_v42 }
 0x2a6   :  { %v988_v15 = vadd.f32 %v987_v1, %v2168_v48  ;;  %v1116_v42 = vmax.f32 %v1067_v46, 0.0 }
 0x2a9   :  { %1173 = vmatpush.bf16.msra.mxu3 %v2130_v20  ;;  %v696_v25 = vpop.permute.xlu1 %695 }
 0x2aa   :  { %v1068_v11 = vpop.f32.mrf.mxu2  ;;  %v975_v48 = vadd.f32 %v974_v37, %v696_v25 }
 0x2ab   :  { %v1069_v49 = vadd.f32 %v1068_v11, %v980_v22 }
 0x2ac   :  { %v1064_v30 = vadd.f32 %v1063_v18, %v975_v48 }
 0x2ad   :  { %v989_v10 = vpop.f32.mrf.mxu1  ;;  %v1117_v0 = vmax.f32 %v1069_v49, 0.0 }
 0x2ae   :  { %v990_v14 = vadd.f32 %v989_v10, %v726_v2  ;;  %v1115_v26 = vmax.f32 %v1064_v30, 0.0 }
 0x2af   :  { %v1138_v63 = vpack.c.bf16 %v1117_v0, %v1116_v42 }
 0x2b0   :  { %v1137_v31 = vpack.c.bf16 %v1115_v26, %v1114_v13 }
 0x2b1   :  { %v1149_v54 = vpop.permute.xlu1 %1148 }
 0x2b2   :  { %v1071_v5 = vpop.f32.mrf.mxu2 }
 0x2b3   :  { %v1072_v23 = vadd.f32 %v1071_v5, %v983_v3 }
 0x2b5   :  { %v1118_v60 = vmax.f32 %v1072_v23, 0.0 }
 0x2ba   :  { %v1073_v8 = vpop.f32.mrf.mxu2 }
 0x2bb   :  { %v1074_v20 = vadd.f32 %v1073_v8, %v985_v12 }
 0x2bd   :  { %v1119_v24 = vmax.f32 %v1074_v20, 0.0 }
 0x2bf   :  { %v1139_v43 = vpack.c.bf16 %v1119_v24, %v1118_v60 }
 0x2c2   :  { %v1076_v6 = vpop.f32.mrf.mxu2 }
 0x2c3   :  { %v1077_v7 = vadd.f32 %v1076_v6, %v988_v15 }
 0x2c5   :  { %v1120_v29 = vmax.f32 %v1077_v7, 0.0 }
 0x2ca   :  { %v1078_v19 = vpop.f32.mrf.mxu2 }
 0x2cb   :  { %v1079_v62 = vadd.f32 %v1078_v19, %v990_v14 }
 0x2cd   :  { %v1121_v56 = vmax.f32 %v1079_v62, 0.0 }
 0x2cf   :  { %v1140_v17 = vpack.c.bf16 %v1121_v56, %v1120_v29 }
 0x2d1   :  { %1174 = vmatpush.bf16.msra.mxu3 %v1140_v17 }
 0x2d5   :  { %1175 = vmatpush.bf16.msra.mxu3 %v1139_v43 }
 0x2d9   :  { %1176 = vmatpush.bf16.msra.mxu3 %v1138_v63 }
 0x2dd   :  { %1177 = vmatpush.bf16.msra.mxu3 %v1137_v31 }
 0x2e1   :  { %1178 = vmatpush.bf16.msra.mxu3 %v2184_v27 }
 0x2e4   :  { %1179 = vmatmul.bf16.vlgmr.msra.gmra.mxu3 %v1155_v32 }
 0x323   :  { %v1167_v37 = vpop.f32.mrf.mxu3 }
 0x324   :  { %v1168_v36 = vadd.f32 %v1167_v37, %v1149_v54 }
 0x32b   :  { %v1169_v44 = vpop.f32.mrf.mxu3 }
 0x367   :  { %v1180_v53 = vpop.f32.mrf.mxu3 }
 0x368   :  { %v1181_v47 = vadd.f32 %v1180_v53, %v1168_v36 }
 0x36a   :  { %1184 = vst [vmem:[#allocation2] sm:$0xff] %v1181_v47 }
 0x36b   :  { %1195 = dma.vmem_to_hbm [thread:$0]  %s1191_s9, 128, %s1193_s6, [#allocation3]  }
 0x36f   :  { %v1182_v33 = vpop.f32.mrf.mxu3 }
 0x370   :  { %1514 = dma.done.wait [#allocation3], 128  }
 0x371   :  { %1515 = vsyncadd [#allocation3], 4294967168 }
 0x372   :  { %1200 = vsyncpa [#allocation3], 1 }

</bundles_post_ra>
